<compile_context>
chip_gen: v6e
topology: v6e:2x2x1
jax: 0.10.0
libtpu: 0.0.40
codegen_flags: <defaults>
</compile_context>

<pallas_src>
import functools

import numpy as np
import jax
import jax.numpy as jnp
from jax.experimental import pallas as pl
from jax.experimental.pallas import tpu as pltpu


def _round_up(x, m):
    return (x + m - 1) // m * m


def _physical_vmem_bytes():
    try:
        info = pltpu.get_tpu_info()
        v = getattr(info, "vmem_capacity_bytes", None)
        if v:
            return int(v)
    except Exception:
        pass
    return 64 << 20          # conservative (v7x-sized) default


def _seq_smooth_kernel(preds_ref, tokens_ref, out_ref, *, smooth_tail, ignore_index, eos):
    preds = preds_ref[...].astype(jnp.float32)           # (Bt, T, C)
    Bt, T, C = preds.shape

    raw = tokens_ref[...]                                 # (Bt, T, S+1) int32, slot 0 = target
    S1 = raw.shape[2]
    valid = raw != ignore_index
    tok = jnp.where(valid, raw, -1)                       # ignored tokens never match iota_c
    valid_f = valid.astype(jnp.float32)

    # ---- one stable log-sum-exp over classes, reused by every term ----
    m_c = jnp.max(preds, axis=2, keepdims=True)                                   # (Bt,T,1)
    lse = jnp.log(jnp.sum(jnp.exp(preds - m_c), axis=2, keepdims=True)) + m_c     # (Bt,T,1)

    iota_c = jax.lax.broadcasted_iota(jnp.int32, (Bt, T, C), 2)

    # ---- master CE: sum_t [ valid*lse - logit[target] ]  (divide by len+1 outside) ----
    tgt_hit = iota_c == tok[:, :, 0:1]
    picked_tgt = jnp.sum(jnp.where(tgt_hit, preds, 0.0), axis=2, keepdims=True)   # (Bt,T,1)
    master_sum = jnp.sum(valid_f[:, :, 0:1] * lse - picked_tgt,
                         axis=1, keepdims=True)                                   # (Bt,1,1)

    # ---- ranking: static-lane EOS test (no full argmax / tie pass over C) ----
    # torch .max(2) picks the FIRST max index: index == eos  iff  preds[...,eos] attains the
    # max and no class < eos also attains it.
    is_eos = preds[:, :, eos:eos + 1] == m_c
    for c_lo in range(eos):                                # eos is a small static constant
        is_eos = jnp.logical_and(is_eos, preds[:, :, c_lo:c_lo + 1] < m_c)
    iota_t = jax.lax.broadcasted_iota(jnp.int32, (Bt, T, 1), 1)
    eos_loc = jnp.min(jnp.where(is_eos, iota_t, T + 1), axis=1, keepdims=True)    # (Bt,1,1)
    # log(max prob) = m_c - lse; positions at/after EOS forced to prob 1 (log 1 = 0)
    log_pmax = jnp.where(iota_t >= eos_loc, 0.0, m_c - lse)                        # (Bt,T,1)
    str_prob = jnp.exp(jnp.sum(log_pmax, axis=1, keepdims=True))                   # (Bt,1,1)
    d = 1.0 - str_prob
    ranking = smooth_tail + (1.0 - smooth_tail) * d * d

    # ---- smoothing CE: fused per-class hit counts -> ONE class reduction for all S texts ----
    sm_hits = jnp.zeros((Bt, T, C), jnp.float32)
    for s in range(1, S1):                                 # S is small & static
        sm_hits = sm_hits + (iota_c == tok[:, :, s:s + 1]).astype(jnp.float32)
    picked_sm = jnp.sum(preds * sm_hits, axis=2, keepdims=True)                    # (Bt,T,1)
    sm_valid_t = jnp.sum(valid_f[:, :, 1:], axis=2, keepdims=True)                 # (Bt,T,1)
    sm_sum = jnp.sum(sm_valid_t * lse - picked_sm, axis=1, keepdims=True)          # (Bt,1,1)
    sm_cnt = jnp.sum(sm_valid_t, axis=1, keepdims=True)
    # NaN iff every smoothing token of an example is ignore_index (mirrors torch's
    # all-ignored CrossEntropyLoss mean); such rows only occur in the padded batch tail,
    # which the wrapper slices off before the mean.
    loss_smooth = sm_sum / sm_cnt                                                  # (Bt,1,1)

    # ---- lane-dense per-example outputs: lane0=master_sum, lane1=ranking, lane2=loss_smooth ----
    lane = jax.lax.broadcasted_iota(jnp.int32, out_ref.shape, 2)
    vals = jnp.where(lane == 0, master_sum, 0.0)
    vals = jnp.where(lane == 1, ranking, vals)
    vals = jnp.where(lane == 2, loss_smooth, vals)
    out_ref[...] = vals


def sequence_smooth_loss(preds, target, smooth_texts, label_lens, *,
                         alpha=0.0, smooth_tail=0.0, ignore_index=0, eos=1,
                         block_b=None):
    """Pallas equivalent of SequenceSmoothLoss_v11.forward.

    preds        : (B, T, C) logits (f32 or bf16; cast happens inside the kernel)
    target       : (B, T)    int token ids (ignore_index marks padding)
    smooth_texts : (B, S, T) int token ids of the S smoothing transcriptions
                   (converter.encode(...)[:, 1:] done host-side)
    label_lens   : (B,)      int length of each ground-truth label
    """
    B, T, C = preds.shape
    S = smooth_texts.shape[1]
    assert smooth_texts.shape == (B, S, T)
    assert label_lens.shape == (B,)
    S1 = S + 1

    # ---- pad the class axis to a multiple of 128 lanes (exact: large finite negative) ----
    C_pad = max(128, _round_up(C, 128))
    if C_pad != C:
        preds = jnp.pad(preds, ((0, 0), (0, 0), (0, C_pad - C)),
                        constant_values=jnp.asarray(-1e9, preds.dtype))

    # ---- pack master target + smoothing ids into one lane-dense token slab (B, T, S+1) ----
    tokens = jnp.concatenate(
        [target.reshape(B, T, 1).astype(jnp.int32),
         jnp.transpose(smooth_texts.astype(jnp.int32), (0, 2, 1))], axis=2)

    # ---- block sizing from a realistic VMEM budget ----
    itemsize = preds.dtype.itemsize
    phys = _physical_vmem_bytes()
    budget = int(phys * 0.45)
    per_b = (2 * T * C_pad * itemsize            # preds block, double-buffered
             + 5 * T * C_pad * 4                 # f32 copy / exp / hit-counts / iota / temps
             + 2 * _round_up(T, 8) * 128 * 4     # token block (lane-padded), double-buffered
             + 2 * 8 * 128 * 4)                  # out block
    fixed = 2 << 20
    if block_b is None:
        cap = (B + 1) // 2 if B > 1 else 1       # keep grid >= 2 (both v7x TensorCores)
        block_b = max(1, min(cap, (budget - fixed) // per_b))
    block_b = int(block_b)

    B_pad = _round_up(B, block_b)
    grid = (B_pad // block_b,)
    if B_pad != B:
        preds = jnp.pad(preds, ((0, B_pad - B), (0, 0), (0, 0)),
                        constant_values=jnp.asarray(-1e9, preds.dtype))
        tokens = jnp.pad(tokens, ((0, B_pad - B), (0, 0), (0, 0)),
                         constant_values=ignore_index)

    est_vmem = per_b * block_b + fixed
    vmem_limit = int(min(int(phys * 0.7), max(int(est_vmem * 1.5), 24 << 20)))

    bytes_accessed = preds.size * itemsize + tokens.size * 4 + B_pad * 128 * 4
    cost = pl.CostEstimate(
        flops=int(B_pad * T * C_pad * (8 + 2 * S1)),
        transcendentals=int(B_pad * T * C_pad + 2 * B_pad * T),
        bytes_accessed=int(bytes_accessed))

    kern = functools.partial(
        _seq_smooth_kernel,
        smooth_tail=float(smooth_tail),
        ignore_index=int(ignore_index), eos=int(eos))

    out = pl.pallas_call(
        kern,
        out_shape=jax.ShapeDtypeStruct((B_pad, 1, 128), jnp.float32),
        grid=grid,
        in_specs=[
            pl.BlockSpec((block_b, T, C_pad), lambda b: (b, 0, 0)),   # preds: streamed
            pl.BlockSpec((block_b, T, S1), lambda b: (b, 0, 0)),      # token slab: streamed
        ],
        out_specs=pl.BlockSpec((block_b, 1, 128), lambda b: (b, 0, 0)),
        compiler_params=pltpu.CompilerParams(
            dimension_semantics=("parallel",),
            vmem_limit_bytes=vmem_limit),
        cost_estimate=cost,
    )(preds, tokens)

    # tiny (B,)-size epilogue (pad rows excluded)
    master_sum = out[:B, 0, 0]
    ranking = out[:B, 0, 1]
    loss_smooth = out[:B, 0, 2]
    denom = label_lens.astype(jnp.float32) + 1.0
    return jnp.mean(master_sum / denom + alpha * ranking * loss_smooth)


def _reference_loss(preds, target, smooth_texts, label_lens, *,
                    alpha, smooth_tail, ignore_index, eos):
    """Pure-JAX mirror of the PyTorch forward (tensor part)."""
    B, T, C = preds.shape
    logp = jax.nn.log_softmax(preds, axis=2)

    # loss_master
    onehot = jax.nn.one_hot(target, C, dtype=preds.dtype)
    picked = jnp.sum(logp * onehot, axis=2)
    valid = target != ignore_index
    ce_none = jnp.where(valid, -picked, 0.0)
    loss_master = ce_none.sum(axis=1) / (label_lens.astype(preds.dtype) + 1.0)

    # confidence / ranking
    prob = jax.nn.softmax(preds, axis=2)
    pmax = prob.max(axis=2)
    pidx = jnp.argmax(preds, axis=2)
    is_eos = pidx == eos
    eos_loc = jnp.where(is_eos.any(axis=1), jnp.argmax(is_eos, axis=1), T + 1)
    mask = jnp.arange(T)[None, :] >= eos_loc[:, None]
    pmax = jnp.where(mask, 1.0, pmax)
    str_prob = jnp.cumprod(pmax, axis=1)[:, -1]
    ranking = smooth_tail + (1.0 - smooth_tail) * (1.0 - str_prob) ** 2

    # loss_smooth (CE with ignore_index, mean over valid positions)
    sm_onehot = jax.nn.one_hot(smooth_texts, C, dtype=preds.dtype)     # (B, S, T, C)
    sm_picked = jnp.sum(logp[:, None] * sm_onehot, axis=3)             # (B, S, T)
    sm_valid = smooth_texts != ignore_index
    sm_sum = jnp.sum(jnp.where(sm_valid, -sm_picked, 0.0), axis=(1, 2))
    sm_cnt = jnp.sum(sm_valid, axis=(1, 2)).astype(preds.dtype)
    loss_smooth = sm_sum / sm_cnt

    loss = loss_master + alpha * ranking * loss_smooth
    return jnp.mean(loss)


if __name__ == "__main__":
    # Module config (from __init__): ignore_index=0, eos=1, smooth_tail=0.0;
    # alpha set nonzero here so the smoothing branch is exercised.
    ignore_index = 0
    eos = 1
    alpha = 1.0
    smooth_tail = 0.0

    # Small shapes implied by forward(): preds (B, T, C), target (B, T),
    # S = 1 visual + 5 semantic smoothing strings per example.
    B, T, C, S = 4, 8, 32, 6
    key = jax.random.PRNGKey(0)
    kp, kt, ks, kl = jax.random.split(key, 4)

    preds = jax.random.normal(kp, (B, T, C), dtype=jnp.float32)
    target = jax.random.randint(kt, (B, T), 1, C, dtype=jnp.int32)
    target = target.at[:, 6:].set(ignore_index)                  # padded tail (ignored)
    smooth_texts = jax.random.randint(ks, (B, S, T), 2, C, dtype=jnp.int32)
    smooth_texts = smooth_texts.at[:, :, 5:].set(ignore_index)   # padded tails (ignored)
    label_lens = jax.random.randint(kl, (B,), 1, 7, dtype=jnp.int32)

    out = sequence_smooth_loss(
        preds, target, smooth_texts, label_lens,
        alpha=alpha, smooth_tail=smooth_tail,
        ignore_index=ignore_index, eos=eos)
    out = jax.block_until_ready(out)

    ref = _reference_loss(
        preds, target, smooth_texts, label_lens,
        alpha=alpha, smooth_tail=smooth_tail,
        ignore_index=ignore_index, eos=eos)

    np.testing.assert_allclose(np.asarray(out), np.asarray(ref),
                               rtol=5e-4, atol=1e-5)
    print("KERNEL_OK")
</pallas_src>

<mosaic_0001>
module attributes {stable_mosaic.version = 11 : i64} {
  func.func @_seq_smooth_kernel(%arg0: i32, %arg1: memref<2x8x128xf32, #tpu.memory_space<vmem>>, %arg2: memref<2x8x7xi32, #tpu.memory_space<vmem>>, %arg3: memref<2x1x128xf32, #tpu.memory_space<vmem>>) attributes {dimension_semantics = [#tpu.dimension_semantics<parallel>], iteration_bounds = array<i64: 2>, scalar_prefetch = 0 : i64, scratch_operands = 0 : i64, tpu.core_type = #tpu.core_type<tc>, window_params = [{transform_indices = @transform_0, window_bounds = array<i64: 2, 8, 128>}, {transform_indices = @transform_1, window_bounds = array<i64: 2, 8, 7>}, {transform_indices = @transform_2, window_bounds = array<i64: 2, 1, 128>}]} {
    %c0 = arith.constant 0 : index
    %c0_0 = arith.constant 0 : index
    %c0_1 = arith.constant 0 : index
    %0 = vector.load %arg1[%c0, %c0_0, %c0_1] : memref<2x8x128xf32, #tpu.memory_space<vmem>>, vector<2x8x128xf32>
    %c0_2 = arith.constant 0 : index
    %c0_3 = arith.constant 0 : index
    %c0_4 = arith.constant 0 : index
    %1 = vector.load %arg2[%c0_2, %c0_3, %c0_4] : memref<2x8x7xi32, #tpu.memory_space<vmem>>, vector<2x8x7xi32>
    %c0_i32 = arith.constant 0 : i32
    %2 = vector.broadcast %c0_i32 : i32 to vector<2x8x7xi32>
    %3 = arith.cmpi ne, %1, %2 : vector<2x8x7xi32>
    %c-1_i32 = arith.constant -1 : i32
    %4 = vector.broadcast %c-1_i32 : i32 to vector<2x8x7xi32>
    %5 = arith.select %3, %1, %4 : vector<2x8x7xi1>, vector<2x8x7xi32>
    %6 = arith.extui %3 : vector<2x8x7xi1> to vector<2x8x7xi32>
    %7 = arith.sitofp %6 : vector<2x8x7xi32> to vector<2x8x7xf32>
    %cst = arith.constant dense<0xFF800000> : vector<2x8xf32>
    %8 = vector.multi_reduction <maximumf>, %0, %cst [2] : vector<2x8x128xf32> to vector<2x8xf32>
    %9 = vector.shape_cast %8 : vector<2x8xf32> to vector<2x8x1xf32>
    %10 = vector.broadcast %9 : vector<2x8x1xf32> to vector<2x8x128xf32>
    %11 = arith.subf %0, %10 : vector<2x8x128xf32>
    %12 = math.exp %11 : vector<2x8x128xf32>
    %cst_5 = arith.constant dense<0.000000e+00> : vector<2x8xf32>
    %13 = vector.multi_reduction <add>, %12, %cst_5 [2] : vector<2x8x128xf32> to vector<2x8xf32>
    %14 = vector.shape_cast %13 : vector<2x8xf32> to vector<2x8x1xf32>
    %15 = math.log %14 : vector<2x8x1xf32>
    %16 = arith.addf %15, %9 : vector<2x8x1xf32>
    %17 = tpu.iota {dimensions = array<i32: 2>} : vector<2x8x128xi32>
    %18 = vector.extract_strided_slice %5 {offsets = [0, 0, 0], sizes = [2, 8, 1], strides = [1, 1, 1]} : vector<2x8x7xi32> to vector<2x8x1xi32>
    %19 = vector.broadcast %18 : vector<2x8x1xi32> to vector<2x8x128xi32>
    %20 = arith.cmpi eq, %17, %19 : vector<2x8x128xi32>
    %cst_6 = arith.constant 0.000000e+00 : f32
    %21 = vector.broadcast %cst_6 : f32 to vector<2x8x128xf32>
    %22 = arith.select %20, %0, %21 : vector<2x8x128xi1>, vector<2x8x128xf32>
    %cst_7 = arith.constant dense<0.000000e+00> : vector<2x8xf32>
    %23 = vector.multi_reduction <add>, %22, %cst_7 [2] : vector<2x8x128xf32> to vector<2x8xf32>
    %24 = vector.shape_cast %23 : vector<2x8xf32> to vector<2x8x1xf32>
    %25 = vector.extract_strided_slice %7 {offsets = [0, 0, 0], sizes = [2, 8, 1], strides = [1, 1, 1]} : vector<2x8x7xf32> to vector<2x8x1xf32>
    %26 = arith.mulf %25, %16 : vector<2x8x1xf32>
    %27 = arith.subf %26, %24 : vector<2x8x1xf32>
    %cst_8 = arith.constant dense<0.000000e+00> : vector<2x1xf32>
    %28 = vector.multi_reduction <add>, %27, %cst_8 [1] : vector<2x8x1xf32> to vector<2x1xf32>
    %29 = vector.shape_cast %28 : vector<2x1xf32> to vector<2x1x1xf32>
    %30 = vector.extract_strided_slice %0 {offsets = [0, 0, 1], sizes = [2, 8, 1], strides = [1, 1, 1]} : vector<2x8x128xf32> to vector<2x8x1xf32>
    %31 = arith.cmpf oeq, %30, %9 : vector<2x8x1xf32>
    %32 = vector.extract_strided_slice %0 {offsets = [0, 0, 0], sizes = [2, 8, 1], strides = [1, 1, 1]} : vector<2x8x128xf32> to vector<2x8x1xf32>
    %33 = arith.cmpf olt, %32, %9 : vector<2x8x1xf32>
    %34 = arith.andi %31, %33 : vector<2x8x1xi1>
    %35 = tpu.iota {dimensions = array<i32: 1>} : vector<2x8x1xi32>
    %c9_i32 = arith.constant 9 : i32
    %36 = vector.broadcast %c9_i32 : i32 to vector<2x8x1xi32>
    %37 = arith.select %34, %35, %36 : vector<2x8x1xi1>, vector<2x8x1xi32>
    %cst_9 = arith.constant dense<2147483647> : vector<2x1xi32>
    %38 = vector.multi_reduction <minsi>, %37, %cst_9 [1] : vector<2x8x1xi32> to vector<2x1xi32>
    %39 = vector.shape_cast %38 : vector<2x1xi32> to vector<2x1x1xi32>
    %40 = vector.broadcast %39 : vector<2x1x1xi32> to vector<2x8x1xi32>
    %41 = arith.cmpi sge, %35, %40 : vector<2x8x1xi32>
    %42 = arith.subf %9, %16 : vector<2x8x1xf32>
    %cst_10 = arith.constant 0.000000e+00 : f32
    %43 = vector.broadcast %cst_10 : f32 to vector<2x8x1xf32>
    %44 = arith.select %41, %43, %42 : vector<2x8x1xi1>, vector<2x8x1xf32>
    %cst_11 = arith.constant dense<0.000000e+00> : vector<2x1xf32>
    %45 = vector.multi_reduction <add>, %44, %cst_11 [1] : vector<2x8x1xf32> to vector<2x1xf32>
    %46 = vector.shape_cast %45 : vector<2x1xf32> to vector<2x1x1xf32>
    %47 = math.exp %46 : vector<2x1x1xf32>
    %cst_12 = arith.constant 1.000000e+00 : f32
    %48 = vector.broadcast %cst_12 : f32 to vector<2x1x1xf32>
    %49 = arith.subf %48, %47 : vector<2x1x1xf32>
    %cst_13 = arith.constant 1.000000e+00 : f32
    %50 = vector.broadcast %cst_13 : f32 to vector<2x1x1xf32>
    %51 = arith.mulf %50, %49 : vector<2x1x1xf32>
    %52 = arith.mulf %51, %49 : vector<2x1x1xf32>
    %cst_14 = arith.constant 0.000000e+00 : f32
    %53 = vector.broadcast %cst_14 : f32 to vector<2x1x1xf32>
    %54 = arith.addf %53, %52 : vector<2x1x1xf32>
    %cst_15 = arith.constant 0.000000e+00 : f32
    %55 = vector.broadcast %cst_15 : f32 to vector<2x8x128xf32>
    %56 = vector.extract_strided_slice %5 {offsets = [0, 0, 1], sizes = [2, 8, 1], strides = [1, 1, 1]} : vector<2x8x7xi32> to vector<2x8x1xi32>
    %57 = vector.broadcast %56 : vector<2x8x1xi32> to vector<2x8x128xi32>
    %58 = arith.cmpi eq, %17, %57 : vector<2x8x128xi32>
    %59 = arith.extui %58 : vector<2x8x128xi1> to vector<2x8x128xi32>
    %60 = arith.sitofp %59 : vector<2x8x128xi32> to vector<2x8x128xf32>
    %61 = arith.addf %55, %60 : vector<2x8x128xf32>
    %62 = vector.extract_strided_slice %5 {offsets = [0, 0, 2], sizes = [2, 8, 1], strides = [1, 1, 1]} : vector<2x8x7xi32> to vector<2x8x1xi32>
    %63 = vector.broadcast %62 : vector<2x8x1xi32> to vector<2x8x128xi32>
    %64 = arith.cmpi eq, %17, %63 : vector<2x8x128xi32>
    %65 = arith.extui %64 : vector<2x8x128xi1> to vector<2x8x128xi32>
    %66 = arith.sitofp %65 : vector<2x8x128xi32> to vector<2x8x128xf32>
    %67 = arith.addf %61, %66 : vector<2x8x128xf32>
    %68 = vector.extract_strided_slice %5 {offsets = [0, 0, 3], sizes = [2, 8, 1], strides = [1, 1, 1]} : vector<2x8x7xi32> to vector<2x8x1xi32>
    %69 = vector.broadcast %68 : vector<2x8x1xi32> to vector<2x8x128xi32>
    %70 = arith.cmpi eq, %17, %69 : vector<2x8x128xi32>
    %71 = arith.extui %70 : vector<2x8x128xi1> to vector<2x8x128xi32>
    %72 = arith.sitofp %71 : vector<2x8x128xi32> to vector<2x8x128xf32>
    %73 = arith.addf %67, %72 : vector<2x8x128xf32>
    %74 = vector.extract_strided_slice %5 {offsets = [0, 0, 4], sizes = [2, 8, 1], strides = [1, 1, 1]} : vector<2x8x7xi32> to vector<2x8x1xi32>
    %75 = vector.broadcast %74 : vector<2x8x1xi32> to vector<2x8x128xi32>
    %76 = arith.cmpi eq, %17, %75 : vector<2x8x128xi32>
    %77 = arith.extui %76 : vector<2x8x128xi1> to vector<2x8x128xi32>
    %78 = arith.sitofp %77 : vector<2x8x128xi32> to vector<2x8x128xf32>
    %79 = arith.addf %73, %78 : vector<2x8x128xf32>
    %80 = vector.extract_strided_slice %5 {offsets = [0, 0, 5], sizes = [2, 8, 1], strides = [1, 1, 1]} : vector<2x8x7xi32> to vector<2x8x1xi32>
    %81 = vector.broadcast %80 : vector<2x8x1xi32> to vector<2x8x128xi32>
    %82 = arith.cmpi eq, %17, %81 : vector<2x8x128xi32>
    %83 = arith.extui %82 : vector<2x8x128xi1> to vector<2x8x128xi32>
    %84 = arith.sitofp %83 : vector<2x8x128xi32> to vector<2x8x128xf32>
    %85 = arith.addf %79, %84 : vector<2x8x128xf32>
    %86 = vector.extract_strided_slice %5 {offsets = [0, 0, 6], sizes = [2, 8, 1], strides = [1, 1, 1]} : vector<2x8x7xi32> to vector<2x8x1xi32>
    %87 = vector.broadcast %86 : vector<2x8x1xi32> to vector<2x8x128xi32>
    %88 = arith.cmpi eq, %17, %87 : vector<2x8x128xi32>
    %89 = arith.extui %88 : vector<2x8x128xi1> to vector<2x8x128xi32>
    %90 = arith.sitofp %89 : vector<2x8x128xi32> to vector<2x8x128xf32>
    %91 = arith.addf %85, %90 : vector<2x8x128xf32>
    %92 = arith.mulf %0, %91 : vector<2x8x128xf32>
    %cst_16 = arith.constant dense<0.000000e+00> : vector<2x8xf32>
    %93 = vector.multi_reduction <add>, %92, %cst_16 [2] : vector<2x8x128xf32> to vector<2x8xf32>
    %94 = vector.shape_cast %93 : vector<2x8xf32> to vector<2x8x1xf32>
    %95 = vector.extract_strided_slice %7 {offsets = [0, 0, 1], sizes = [2, 8, 6], strides = [1, 1, 1]} : vector<2x8x7xf32> to vector<2x8x6xf32>
    %cst_17 = arith.constant dense<0.000000e+00> : vector<2x8xf32>
    %96 = vector.multi_reduction <add>, %95, %cst_17 [2] : vector<2x8x6xf32> to vector<2x8xf32>
    %97 = vector.shape_cast %96 : vector<2x8xf32> to vector<2x8x1xf32>
    %98 = arith.mulf %97, %16 : vector<2x8x1xf32>
    %99 = arith.subf %98, %94 : vector<2x8x1xf32>
    %cst_18 = arith.constant dense<0.000000e+00> : vector<2x1xf32>
    %100 = vector.multi_reduction <add>, %99, %cst_18 [1] : vector<2x8x1xf32> to vector<2x1xf32>
    %101 = vector.shape_cast %100 : vector<2x1xf32> to vector<2x1x1xf32>
    %cst_19 = arith.constant dense<0.000000e+00> : vector<2x1xf32>
    %102 = vector.multi_reduction <add>, %97, %cst_19 [1] : vector<2x8x1xf32> to vector<2x1xf32>
    %103 = vector.shape_cast %102 : vector<2x1xf32> to vector<2x1x1xf32>
    %104 = arith.divf %101, %103 : vector<2x1x1xf32>
    %105 = tpu.iota {dimensions = array<i32: 2>} : vector<2x1x128xi32>
    %c0_i32_20 = arith.constant 0 : i32
    %106 = vector.broadcast %c0_i32_20 : i32 to vector<2x1x128xi32>
    %107 = arith.cmpi eq, %105, %106 : vector<2x1x128xi32>
    %cst_21 = arith.constant 0.000000e+00 : f32
    %108 = vector.shape_cast %29 : vector<2x1x1xf32> to vector<2x1x1xf32>
    %109 = vector.broadcast %108 : vector<2x1x1xf32> to vector<2x1x128xf32>
    %110 = vector.broadcast %cst_21 : f32 to vector<2x1x128xf32>
    %111 = arith.select %107, %109, %110 : vector<2x1x128xi1>, vector<2x1x128xf32>
    %c1_i32 = arith.constant 1 : i32
    %112 = vector.broadcast %c1_i32 : i32 to vector<2x1x128xi32>
    %113 = arith.cmpi eq, %105, %112 : vector<2x1x128xi32>
    %114 = vector.shape_cast %54 : vector<2x1x1xf32> to vector<2x1x1xf32>
    %115 = vector.broadcast %114 : vector<2x1x1xf32> to vector<2x1x128xf32>
    %116 = arith.select %113, %115, %111 : vector<2x1x128xi1>, vector<2x1x128xf32>
    %c2_i32 = arith.constant 2 : i32
    %117 = vector.broadcast %c2_i32 : i32 to vector<2x1x128xi32>
    %118 = arith.cmpi eq, %105, %117 : vector<2x1x128xi32>
    %119 = vector.shape_cast %104 : vector<2x1x1xf32> to vector<2x1x1xf32>
    %120 = vector.broadcast %119 : vector<2x1x1xf32> to vector<2x1x128xf32>
    %121 = arith.select %118, %120, %116 : vector<2x1x128xi1>, vector<2x1x128xf32>
    %c0_22 = arith.constant 0 : index
    %c0_23 = arith.constant 0 : index
    %c0_24 = arith.constant 0 : index
    %122 = vector.load %arg3[%c0_22, %c0_23, %c0_24] : memref<2x1x128xf32, #tpu.memory_space<vmem>>, vector<2x1x128xf32>
    tpu.vector_store %arg3[%c0_22, %c0_23, %c0_24], %121 {strides = array<i32>} : memref<2x1x128xf32, #tpu.memory_space<vmem>>, vector<2x1x128xf32>,
    return
  }
  func.func @transform_0(%arg0: i32) -> (i32, i32, i32) {
    %c0_i32 = arith.constant 0 : i32
    %c0_i32_0 = arith.constant 0 : i32
    %c0_i32_1 = arith.constant 0 : i32
    return %arg0, %c0_i32, %c0_i32_0 : i32, i32, i32
  }
  func.func @transform_1(%arg0: i32) -> (i32, i32, i32) {
    %c0_i32 = arith.constant 0 : i32
    %c0_i32_0 = arith.constant 0 : i32
    %c0_i32_1 = arith.constant 0 : i32
    return %arg0, %c0_i32, %c0_i32_0 : i32, i32, i32
  }
  func.func @transform_2(%arg0: i32) -> (i32, i32, i32) {
    %c0_i32 = arith.constant 0 : i32
    %c0_i32_0 = arith.constant 0 : i32
    %c0_i32_1 = arith.constant 0 : i32
    return %arg0, %c0_i32, %c0_i32_0 : i32, i32, i32
  }
}

</mosaic_0001>

<bundles_post_ra>
// kernel: tpu_custom_call.1
= control target key start
LH: loop header
LB: loop body
LE: loop exit
PB: predicated region body
PF: predicated region fallthrough
CT: control target
= control target key end

     0   :  { %7 = vsyncpa [#allocation3], 0  ;;  %s1011_s0 = inlined_call_operand.vmem [shape: f32[4,8,128], index: 0, kind: input, shape index: {}]   ;;  %s1012_s1 = inlined_call_operand.vmem [shape: s32[4,8,7], index: 1, kind: input, shape index: {}]   ;;  %s1013_s2 = inlined_call_operand.hbm [shape: f32[4,1,128], index: 2, kind: output, shape index: {}]  }
   0x1   :  { %9 = vsyncpa [#allocation3 + $0x1], 0  ;;  %s763_s9 = smov 0   ;;  %s765_s10 = smov 0  }
   0x2   :  { %s767_s11 = smov 0   ;;  %s769_s12 = smov 0  }
   0x3 LB: > { %s784_s13 = sadd.s32 4294967295, %s734_s12   ;;  %s559_s14 = sadd.s32 4294967294, %s734_s12   ;;  %s734_s12 = sphi %s769_s12, %s1019_s12   ;;  %s730_s11 = sphi %s767_s11, %s1018_s11   ;;  %s726_s10 = sphi %s765_s10, %s1017_s10   ;;  %s722_s9 = sphi %s763_s9, %s1016_s9  }
   0x4   : > { %s788_s15 = sadd.s32 1, %s734_s12   ;;  %s74_s16 = sadd.s32 1, %s730_s11 }
   0x5   : > { %s71_s17 = ssub.s32 %s734_s12, %s788_s15  ;;  %p84_p0 = scmp.ne.s32.totalorder %s730_s11, %s726_s10 }
   0x6   : > { %p72_p1 = scmp.eq.s32.totalorder %s71_s17, 0  ;;  %p85_p2 = scmp.eq.s32.totalorder %s784_s13, 1 }
   0x7   : > { %p90_p3 = scmp.ne.s32.totalorder %s726_s10, %s722_s9  ;;  %p91_p4 = scmp.eq.s32.totalorder %s559_s14, 1 }
   0x8   : > { %s799_s18 = scalar_select %p72_p1, %s730_s11, %s74_s16  }
   0x9   : > { %p801_p5 = por %p85_p2, %p84_p0  ;;  %p805_p6 = por %p91_p4, %p90_p3 }
   0xa   : > { %p562_p7 = scmp.ge.s32.totalorder %s734_s12, 1  ;;  %p127_p8 = scmp.lt.s32.totalorder %s734_s12, 3 }
   0xc   : > { %p128_p9 = pnand %p562_p7, %p127_p8 }
   0xd   : > { %s564_s21 = sshll.u32 (!%p128_p9), %s784_s13, 1  ;;  %s744_s29 = smov (!%p128_p9), 127  }
   0xe   : > { %131 = sbr.rel (%p128_p9) target bundleno = 553 (0x229), region = 28  ;;  %p155_p10 = scmp.lt.s32.totalorder (!%p128_p9), %s564_s21, 3 }
   0xf   : > { %s745_s30 = smov (!%p128_p9), 1   ;;  %s151_s3 = sand.u32 (!%p128_p9), 1, %s726_s10  }
  0x10   : > { %s563_s4 = sshll.u32 (!%p128_p9), %s151_s3, 1  ;;  %s587_s7 = sshll.u32 (!%p128_p9), %s784_s13, 5 }
  0x11   : > { %s153_s5 = scalar_lea.vmem (!%p128_p9), [#allocation2], %s563_s4  ;;  %s966_s16 = scalar_lea.hbm (!%p128_p9), %s1013_s2, %s587_s7 }
  0x12   : > { %s485_s6 = sshll.u32 (!%p128_p9), %s153_s5, 4  ;;  %s970_s13 = scalar_lea.sflag (!%p128_p9), [#allocation3], %s151_s3  ;;  %s959_s6 = int_to_ptr.vmem [resolvable:$true] %s485_s6 }
  0x13   : > { %v736_v0 = vmov 1   ;;  %v737_v1 = vmov 0   ;;  %s1021_s21 = smov (!%p155_p10, %s564_s21), 3  ;;  %v738_v8 = vmov 3   ;;  %v739_v9 = vmov 4   ;;  %s674_s17 = scalar_lea.vmem %s959_s6, 32 }
  0x14   : > { %639 = vset.pattern.permute.xlu0 %v736_v0  ;;  %638 = vset.pattern.permute.xlu1 %v737_v1  ;;  %s565_s22 = sshll.u32 %s1021_s21, 3  ;;  %v740_v10 = vmov 5   ;;  %v741_v11 = vmov 2   ;;  %v742_v12 = vmov 0.0   ;;  %v743_v16 = vmov 6   ;;  %p675_p11 = scmp.ne.s32.totalorder %s959_s6, %s674_s17 }
  0x15   : > { %s158_s25 = scalar_lea.vmem %s1011_s0, %s565_s22  ;;  %s164_s28 = scalar_lea.vmem %s1012_s1, %s565_s22  ;;  %v199_v23 = vlaneseq  ;;  %vm401_vm12 = vcmask 48128  }
  0x16   : > { %v820_v2 = vld [vmem:[%s158_s25] sm:$0xff]  ;;  %v170_v4 = vld [vmem:[%s164_s28 + $0x8] sm:$0xff]  ;;  %p676_p12 = pnand %p675_p11, %p801_p5  ;;  %s746_s21 = smov [#allocation2]  }
  0x17   : > { %v169_v3 = vld [vmem:[%s164_s28] sm:$0xff]  ;;  %179 = vmax.xlane.f32.xlu0 %v820_v2  ;;  %v823_v5 = vld [vmem:[%s158_s25 + $0x8] sm:$0xff]  ;;  %vm172_vm1 = vcmp.ne.s32.totalorder %v170_v4, 0  ;;  %v870_v25 = vand.u32 127, %v199_v23  ;;  %v902_v61 = vshrl.u32 %v199_v23, 7  ;;  %s678_s22 = sshll.u32 %s746_s21, 4  ;;  %s679_s22 = int_to_ptr.vmem [resolvable:$false] %s678_s22 }
  0x18   : > { %vm171_vm0 = vcmp.ne.s32.totalorder %v169_v3, 0  ;;  %v831_v7 = vsel %vm172_vm1, %v170_v4, 4294967295  ;;  %v850_v14 = vsel %vm172_vm1, 1.0, %v742_v12  ;;  %p677_p13 = pneg %p676_p12  ;;  %s680_s23 = scalar_lea.vmem %s679_s22, 64 }
  0x19   : > { %v826_v6 = vsel %vm171_vm0, %v169_v3, 4294967295  ;;  %v846_v13 = vsel %vm171_vm0, 1.0, %v742_v12  ;;  %p681_p0 = scmp.lt.s32.totalorder %s959_s6, %s679_s22  ;;  %p682_p1 = scmp.lt.s32.totalorder %s680_s23, %s674_s17 }
  0x1a   : > { %202 = vperm.xlu1 %638, %v826_v6   ;;  %v647_v15 = vpack.i.bf16 %v850_v14, %v846_v13 }
  0x1b   : > { %181 = vmax.xlane.f32.xlu0 %v823_v5  ;;  %p683_p2 = por %p682_p1, %p681_p0 }
  0x1d   : > { %p684_p3 = pnand %p683_p2, %p677_p13 }
  0x1e   : > { %205 = vperm.xlu1 %638, %v831_v7  }
  0x22   : > { %640 = vset.pattern.permute.xlu1 %v736_v0 }
  0x23   : > { %307 = vperm.xlu1 %640, %v831_v7  }
  0x27   : > { %643 = vset.pattern.permute.xlu1 %v738_v8 }
  0x28   : > { %335 = vperm.xlu1 %643, %v831_v7  }
  0x2c   : > { %644 = vset.pattern.permute.xlu1 %v739_v9 }
  0x2d   : > { %346 = vperm.xlu1 %644, %v826_v6  }
  0x31   : > { %646 = vset.pattern.permute.xlu1 %v740_v10  ;;  %304 = vperm.xlu0 %639, %v826_v6  }
  0x32   : > { %360 = vperm.xlu1 %646, %v826_v6  }
  0x35   : > { %641 = vset.pattern.permute.xlu0 %v741_v11 }
  0x36   : > { %363 = vperm.xlu1 %646, %v831_v7   ;;  %318 = vperm.xlu0 %641, %v826_v6  }
  0x3a   : > { %321 = vperm.xlu0 %641, %v831_v7   ;;  %652 = vset.pattern.permute.xlu1 %v743_v16 }
  0x3e   : > { %642 = vset.pattern.permute.xlu0 %v738_v8 }
  0x3f   : > { %332 = vperm.xlu0 %642, %v826_v6  }
  0x43   : > { %645 = vset.pattern.permute.xlu0 %v739_v9 }
  0x44   : > { %349 = vperm.xlu0 %645, %v831_v7  }
  0x48   : > { %648 = vrot.lane.b32.xlu0 %v647_v15, %s744_s29 }
  0x49   : > { %653 = vset.pattern.permute.xlu0 %v743_v16 }
  0x95   : > { %v203_v24 = vpop.permute.xlu1 %202 }
  0x96   : > { %vm207_vm11 = vcmp.eq.s32.totalorder %v870_v25, %v203_v24 }
  0x97   : > { %v209_v52 = vsel %vm207_vm11, %v820_v2, 0.0 }
  0x99   : > { %v206_v27 = vpop.permute.xlu1 %205 }
  0x9a   : > { %vm208_vm13 = vcmp.eq.s32.totalorder %v870_v25, %v206_v27 }
  0x9b   : > { %v210_v55 = vsel %vm208_vm13, %v823_v5, 0.0 }
  0x9e   : > { %v308_v31 = vpop.permute.xlu1 %307 }
  0x9f   : > { %vm310_vm6 = vcmp.eq.s32.totalorder %v870_v25, %v308_v31 }
  0xa0   : > { %v855_v17 = vpop.xlane.xlu0 %179  ;;  %v571_v38 = vsel %vm310_vm6, 1.0, %v742_v12  ;;  %vm252_vm6 = vcmask 15368  }
  0xa1   : > { %vm236_vm2 = vcmp.lt.f32.partialorder %v820_v2, %v855_v17  ;;  %v183_v28 = vsub.f32 %v820_v2, %v855_v17  ;;  %vm234_vm1 = vcmp.eq.f32.partialorder %v820_v2, %v855_v17 }
  0xa2   : > { %v238_v18 = vsel %vm236_vm2, 1, %v737_v1 }
  0xa3   : > { %240 = vrot.lane.b32.xlu0 %v238_v18, %s745_s30  ;;  %v185_v33 = vmul.f32 1.442695, %v183_v28  ;;  %v336_v39 = vpop.permute.xlu1 %335 }
  0xa4   : > { %v861_v19 = vpop.xlane.xlu0 %181  ;;  %vm338_vm8 = vcmp.eq.s32.totalorder %v870_v25, %v336_v39 }
  0xa5   : > { %v184_v20 = vsub.f32 %v823_v5, %v861_v19  ;;  %vm237_vm3 = vcmp.lt.f32.partialorder %v823_v5, %v861_v19  ;;  %v575_v42 = vsel %vm338_vm8, 1.0, %v742_v12 }
  0xa6   : > { %v239_v21 = vsel %vm237_vm3, 1, %v737_v1  ;;  %vm235_vm3 = vcmp.eq.f32.partialorder %v823_v5, %v861_v19 }
  0xa7   : > { %v187_v22 = vmul.f32 1.442695, %v184_v20  ;;  %242 = vrot.lane.b32.xlu0 %v239_v21, %s745_s30 }
  0xa8   : > { %v347_v57 = vpop.permute.xlu1 %346 }
  0xa9   : > { %658 = vpow2.f32 %v187_v22  ;;  %vm351_vm0 = vcmp.eq.s32.totalorder %v870_v25, %v347_v57 }
  0xaa   : > { %660 = vpow2.f32 %v185_v33  ;;  %v576_v63 = vsel %vm351_vm0, 1.0, %v742_v12 }
  0xac   : > { %v305_v26 = vpop.permute.xlu0 %304 }
  0xad   : > { %vm309_vm4 = vcmp.eq.s32.totalorder %v870_v25, %v305_v26  ;;  %v361_v59 = vpop.permute.xlu1 %360 }
  0xae   : > { %v570_v29 = vsel %vm309_vm4, 1.0, %v742_v12 }
  0xb1   : > { %v319_v30 = vpop.permute.xlu0 %318  ;;  %v364_v62 = vpop.permute.xlu1 %363 }
  0xb2   : > { %vm323_vm5 = vcmp.eq.s32.totalorder %v870_v25, %v319_v30 }
  0xb3   : > { %v572_v32 = vsel %vm323_vm5, 1.0, %v742_v12  ;;  %vm365_vm5 = vcmp.eq.s32.totalorder %v870_v25, %v361_v59 }
  0xb4   : > { %v329_v34 = vadd.f32 %v572_v32, %v570_v29 }
  0xb5   : > { %v322_v35 = vpop.permute.xlu0 %321 }
  0xb6   : > { %v659_v36 = vpop.eup %658  ;;  %vm324_vm7 = vcmp.eq.s32.totalorder %v870_v25, %v322_v35 }
  0xb7   : > { %191 = vadd.xlane.f32.xlu1 %v659_v36  ;;  %v573_v37 = vsel %vm324_vm7, 1.0, %v742_v12  ;;  %v661_v49 = vpop.eup %660 }
  0xb8   : > { %v330_v41 = vadd.f32 %v573_v37, %v571_v38 }
  0xba   : > { %v333_v40 = vpop.permute.xlu0 %332  ;;  %v344_v45 = vadd.f32 %v575_v42, %v330_v41 }
  0xbb   : > { %vm337_vm9 = vcmp.eq.s32.totalorder %v870_v25, %v333_v40 }
  0xbc   : > { %v574_v43 = vsel %vm337_vm9, 1.0, %v742_v12 }
  0xbd   : > { %v343_v44 = vadd.f32 %v574_v43, %v329_v34 }
  0xbf   : > { %v350_v46 = vpop.permute.xlu0 %349 }
  0xc0   : > { %vm352_vm10 = vcmp.eq.s32.totalorder %v870_v25, %v350_v46 }
  0xc1   : > { %v577_v47 = vsel %vm352_vm10, 1.0, %v742_v12  ;;  %vm366_vm10 = vcmp.eq.s32.totalorder %v870_v25, %v364_v62 }
  0xc2   : > { %v888_v48 = vadd.f32 %v577_v47, %v344_v45  ;;  %v579_v28 = vsel %vm366_vm10, 1.0, %v742_v12 }
  0xc3   : > { %v649_v50 = vpop.permute.xlu0 %648 }
  0xc4   : > { %v651_v51 = vunpack.i.h.bf16 %v649_v50  ;;  %v650_v54 = vunpack.i.l.bf16 %v649_v50 }
  0xc6   : > { %189 = vadd.xlane.f32.xlu0 %v661_v49  ;;  %v405_v53 = vsel %vm401_vm12, %v651_v51, 0.0  ;;  %v402_v56 = vsel %vm401_vm12, %v650_v54, 0.0 }
  0xc8   : > { %374 = vperm.xlu1 %652, %v826_v6   ;;  %v357_v6 = vadd.f32 %v576_v63, %v343_v44 }
  0xcc   : > { %655 = vset.pattern.permute.xlu1 %v737_v1 }
  0xdc   : > { %377 = vperm.xlu0 %653, %v831_v7   ;;  %v578_v7 = vsel %vm365_vm5, 1.0, %v742_v12  ;;  %vm466_vm5 = vcmp.eq.s32.totalorder %v870_v25, 2 }
  0xdd   : > { %v371_v11 = vadd.f32 %v578_v7, %v357_v6 }
  0xe0   : > { %654 = vset.pattern.permute.xlu0 %v737_v1 }
  0xec   : > { %211 = vadd.xlane.f32.xlu1 %v209_v52 }
  0xf0   : > { %406 = vadd.xlane.f32.xlu1 %v405_v53 }
  0xfb   : > { %213 = vadd.xlane.f32.xlu0 %v210_v55 }
  0xff   : > { %403 = vadd.xlane.f32.xlu0 %v402_v56 }
 0x115   : > { %v241_v58 = vpop.permute.xlu0 %240 }
 0x116   : > { %vm244_vm14 = vcmp.ne.s32.totalorder %v241_v58, 0 }
 0x117   : > { %vm246_vm2 = vmand %vm234_vm1, %vm244_vm14 }
 0x118   : > { %v250_v1 = vsel %vm246_vm2, %v902_v61, 9  ;;  %vm219_vm2 = vcmask 7168  }
 0x119   : > { %v243_v60 = vpop.permute.xlu0 %242  ;;  %v253_v8 = vsel %vm252_vm6, %v250_v1, 2147483647 }
 0x11a   : > { %vm245_vm15 = vcmp.ne.s32.totalorder %v243_v60, 0  ;;  %v254_v15 = vrot.slane %v253_v8, 4 }
 0x11b   : > { %vm247_vm4 = vmand %vm235_vm3, %vm245_vm15  ;;  %vm440_vm3 = vcmp.eq.s32.totalorder %v870_v25, 0 }
 0x11c   : > { %v251_v3 = vsel %vm247_vm4, %v902_v61, 9  ;;  %vm255_vm8 = vcmp.lt.s32.totalorder %v253_v8, %v254_v15  ;;  %vm453_vm4 = vcmp.eq.s32.totalorder %v870_v25, 1 }
 0x11d   : > { %v263_v9 = vsel %vm252_vm6, %v251_v3, 2147483647  ;;  %v256_v22 = vsel %vm255_vm8, %v253_v8, %v254_v15 }
 0x11e   : > { %v264_v16 = vrot.slane %v263_v9, 4  ;;  %v257_v24 = vrot.slane %v256_v22, 2 }
 0x120   : > { %vm265_vm9 = vcmp.lt.s32.totalorder %v263_v9, %v264_v16  ;;  %vm258_vm11 = vcmp.lt.s32.totalorder %v256_v22, %v257_v24 }
 0x121   : > { %v266_v23 = vsel %vm265_vm9, %v263_v9, %v264_v16  ;;  %v259_v30 = vsel %vm258_vm11, %v256_v22, %v257_v24 }
 0x122   : > { %v267_v27 = vrot.slane %v266_v23, 2  ;;  %v260_v33 = vrot.slane %v259_v30, 1 }
 0x124   : > { %vm268_vm12 = vcmp.lt.s32.totalorder %v266_v23, %v267_v27  ;;  %vm261_vm14 = vcmp.lt.s32.totalorder %v259_v30, %v260_v33 }
 0x125   : > { %v269_v31 = vsel %vm268_vm12, %v266_v23, %v267_v27  ;;  %v262_v42 = vsel %vm261_vm14, %v259_v30, %v260_v33 }
 0x126   : > { %v270_v36 = vrot.slane %v269_v31, 1  ;;  %vm273_vm0 = vcmp.ge.s32.totalorder %v902_v61, %v262_v42 }
 0x128   : > { %vm271_vm15 = vcmp.lt.s32.totalorder %v269_v31, %v270_v36 }
 0x129   : > { %v272_v44 = vsel %vm271_vm15, %v269_v31, %v270_v36 }
 0x12a   : > { %vm274_vm1 = vcmp.ge.s32.totalorder %v902_v61, %v272_v44 }
 0x140   : > { %v192_v4 = vpop.xlane.xlu1 %191 }
 0x141   : > { %662 = vlog2.f32 %v192_v4 }
 0x144   : > { %v375_v10 = vpop.permute.xlu1 %374 }
 0x145   : > { %vm379_vm7 = vcmp.eq.s32.totalorder %v870_v25, %v375_v10 }
 0x146   : > { %v580_v18 = vsel %vm379_vm7, 1.0, %v742_v12 }
 0x147   : > { %v385_v20 = vadd.f32 %v580_v18, %v371_v11 }
 0x149   : > { %v387_v21 = vmul.f32 %v385_v20, %v820_v2  ;;  %v372_v2 = vadd.f32 %v579_v28, %v888_v48 }
 0x14b   : > { %389 = vadd.xlane.f32.xlu0 %v387_v21 }
 0x14e   : > { %v663_v29 = vpop.eup %662 }
 0x14f   : > { %v190_v26 = vpop.xlane.xlu0 %189  ;;  %v196_v34 = vmul.f32 0.6931472, %v663_v29 }
 0x150   : > { %664 = vlog2.f32 %v190_v26 }
 0x151   : > { %v923_v40 = vadd.f32 %v196_v34, %v861_v19 }
 0x153   : > { %v216_v8 = vmul.f32 %v850_v14, %v923_v40 }
 0x157   : > { %v378_v32 = vpop.permute.xlu0 %377 }
 0x158   : > { %vm380_vm13 = vcmp.eq.s32.totalorder %v870_v25, %v378_v32 }
 0x159   : > { %v581_v35 = vsel %vm380_vm13, 1.0, %v742_v12  ;;  %v276_v12 = vsub.f32 %v861_v19, %v923_v40 }
 0x15a   : > { %v386_v37 = vadd.f32 %v581_v35, %v372_v2 }
 0x15b   : > { %v278_v46 = vsel %vm274_vm1, 0.0, %v276_v12 }
 0x15c   : > { %v388_v38 = vmul.f32 %v386_v37, %v823_v5  ;;  %v286_v49 = vsel %vm252_vm6, %v278_v46, 0.0 }
 0x15d   : > { %v665_v39 = vpop.eup %664  ;;  %v287_v50 = vrot.slane %v286_v49, 4 }
 0x15e   : > { %v194_v41 = vmul.f32 0.6931472, %v665_v39  ;;  %391 = vadd.xlane.f32.xlu1 %v388_v38 }
 0x15f   : > { %v288_v53 = vadd.f32 %v287_v50, %v286_v49 }
 0x160   : > { %v926_v43 = vadd.f32 %v194_v41, %v855_v17 }
 0x161   : > { %v289_v19 = vrot.slane %v288_v53, 2 }
 0x162   : > { %v275_v45 = vsub.f32 %v855_v17, %v926_v43  ;;  %v215_v17 = vmul.f32 %v846_v13, %v926_v43 }
 0x163   : > { %v290_v58 = vadd.f32 %v289_v19, %v288_v53 }
 0x164   : > { %v277_v5 = vsel %vm273_vm0, 0.0, %v275_v45 }
 0x165   : > { %v279_v47 = vsel %vm252_vm6, %v277_v5, 0.0  ;;  %v291_v63 = vrot.slane %v290_v58, 1 }
 0x166   : > { %v280_v48 = vrot.slane %v279_v47, 4 }
 0x167   : > { %v292_v6 = vadd.f32 %v291_v63, %v290_v58 }
 0x168   : > { %v281_v51 = vadd.f32 %v280_v48, %v279_v47 }
 0x169   : > { %v295_v9 = vmul.f32 1.442695, %v292_v6 }
 0x16a   : > { %v282_v52 = vrot.slane %v281_v51, 2 }
 0x16c   : > { %v283_v54 = vadd.f32 %v282_v52, %v281_v51 }
 0x16e   : > { %v284_v57 = vrot.slane %v283_v54, 1 }
 0x170   : > { %v285_v62 = vadd.f32 %v284_v57, %v283_v54 }
 0x172   : > { %v293_v4 = vmul.f32 1.442695, %v285_v62 }
 0x174   : > { %666 = vpow2.f32 %v293_v4 }
 0x175   : > { %v212_v55 = vpop.xlane.xlu1 %211  ;;  %668 = vpow2.f32 %v295_v9 }
 0x176   : > { %v217_v56 = vsub.f32 %v215_v17, %v212_v55 }
 0x178   : > { %v220_v59 = vsel %vm219_vm2, %v217_v56, 0.0 }
 0x179   : > { %v221_v60 = vrot.slane %v220_v59, 4  ;;  %v407_v32 = vpop.xlane.xlu1 %406 }
 0x17a   : > { %v430_v2 = vrot.slane %v407_v32, 4  ;;  %v409_v44 = vmul.f32 %v407_v32, %v923_v40 }
 0x17b   : > { %v222_v61 = vadd.f32 %v221_v60, %v220_v59 }
 0x17c   : > { %v431_v35 = vadd.f32 %v430_v2, %v407_v32 }
 0x17d   : > { %v223_v1 = vrot.slane %v222_v61, 2 }
 0x17e   : > { %v432_v41 = vrot.slane %v431_v35, 2 }
 0x17f   : > { %v224_v3 = vadd.f32 %v223_v1, %v222_v61 }
 0x180   : > { %v433_v45 = vadd.f32 %v432_v41, %v431_v35 }
 0x181   : > { %v225_v7 = vrot.slane %v224_v3, 1  ;;  %v667_v22 = vpop.eup %666 }
 0x182   : > { %v297_v26 = vsub.f32 1.0, %v667_v22  ;;  %v669_v14 = vpop.eup %668  ;;  %v434_v48 = vrot.slane %v433_v45, 1 }
 0x183   : > { %v226_v13 = vadd.f32 %v225_v7, %v224_v3  ;;  %v298_v28 = vsub.f32 1.0, %v669_v14 }
 0x184   : > { %v214_v10 = vpop.xlane.xlu0 %213  ;;  %v299_v27 = vmul.f32 %v297_v26, %v297_v26  ;;  %v435_v52 = vadd.f32 %v434_v48, %v433_v45 }
 0x185   : > { %v218_v11 = vsub.f32 %v216_v8, %v214_v10  ;;  %443 = vperm.xlu0 %654, %v226_v13   ;;  %v300_v29 = vmul.f32 %v298_v28, %v298_v28 }
 0x187   : > { %v227_v15 = vsel %vm219_vm2, %v218_v11, 0.0 }
 0x188   : > { %v228_v16 = vrot.slane %v227_v15, 4  ;;  %v404_v30 = vpop.xlane.xlu0 %403 }
 0x189   : > { %657 = vset.pattern.permute.xlu0 %v736_v0  ;;  %v424_v31 = vrot.slane %v404_v30, 4  ;;  %v408_v37 = vmul.f32 %v404_v30, %v926_v43 }
 0x18a   : > { %v229_v18 = vadd.f32 %v228_v16, %v227_v15 }
 0x18b   : > { %v425_v33 = vadd.f32 %v424_v31, %v404_v30 }
 0x18c   : > { %v230_v20 = vrot.slane %v229_v18, 2 }
 0x18d   : > { %v426_v36 = vrot.slane %v425_v33, 2 }
 0x18e   : > { %v231_v21 = vadd.f32 %v230_v20, %v229_v18 }
 0x18f   : > { %v427_v42 = vadd.f32 %v426_v36, %v425_v33 }
 0x190   : > { %v232_v23 = vrot.slane %v231_v21, 1 }
 0x191   : > { %v428_v5 = vrot.slane %v427_v42, 1 }
 0x192   : > { %v233_v24 = vadd.f32 %v232_v23, %v231_v21 }
 0x193   : > { %v429_v49 = vadd.f32 %v428_v5, %v427_v42 }
 0x194   : > { %448 = vperm.xlu1 %655, %v233_v24  }
 0x195   : > { %670 = vrcp.f32 %v429_v49 }
 0x196   : > { %672 = vrcp.f32 %v435_v52 }
 0x198   : > { %656 = vset.pattern.permute.xlu1 %v736_v0 }
 0x199   : > { %456 = vperm.xlu1 %656, %v299_v27  }
 0x19d   : > { %461 = vperm.xlu1 %656, %v300_v29  }
 0x1a2   : > { %v671_v57 = vpop.eup %670 }
 0x1a3   : > { %v673_v1 = vpop.eup %672 }
 0x1d4   : > { %v390_v34 = vpop.xlane.xlu0 %389 }
 0x1d5   : > { %v410_v38 = vsub.f32 %v408_v37, %v390_v34 }
 0x1d7   : > { %v412_v0 = vrot.slane %v410_v38, 4 }
 0x1d9   : > { %v413_v46 = vadd.f32 %v412_v0, %v410_v38 }
 0x1db   : > { %v414_v50 = vrot.slane %v413_v46, 2 }
 0x1dd   : > { %v415_v43 = vadd.f32 %v414_v50, %v413_v46 }
 0x1df   : > { %v416_v54 = vrot.slane %v415_v43, 1 }
 0x1e1   : > { %v417_v17 = vadd.f32 %v416_v54, %v415_v43 }
 0x1e3   : > { %v437_v60 = vmul.f32 %v671_v57, %v417_v17 }
 0x1e7   : > { %v392_v39 = vpop.xlane.xlu1 %391 }
 0x1e8   : > { %v411_v12 = vsub.f32 %v409_v44, %v392_v39 }
 0x1ea   : > { %v418_v47 = vrot.slane %v411_v12, 4 }
 0x1ec   : > { %v419_v51 = vadd.f32 %v418_v47, %v411_v12 }
 0x1ee   : > { %v420_v53 = vrot.slane %v419_v51, 2 }
 0x1f0   : > { %v421_v19 = vadd.f32 %v420_v53, %v419_v51 }
 0x1f2   : > { %v422_v55 = vrot.slane %v421_v19, 1 }
 0x1f4   : > { %v423_v58 = vadd.f32 %v422_v55, %v421_v19 }
 0x1f6   : > { %v439_v4 = vmul.f32 %v673_v1, %v423_v58 }
 0x200   : > { %v444_v56 = vpop.permute.xlu0 %443 }
 0x201   : > { %v451_v59 = vsel %vm440_vm3, %v444_v56, 0.0 }
 0x20f   : > { %v449_v40 = vpop.permute.xlu1 %448 }
 0x210   : > { %v452_v3 = vsel %vm440_vm3, %v449_v40, 0.0 }
 0x214   : > { %v457_v61 = vpop.permute.xlu1 %456 }
 0x215   : > { %v464_v62 = vsel %vm453_vm4, %v457_v61, %v451_v59 }
 0x216   : > { %v467_v63 = vsel %vm466_vm5, %v437_v60, %v464_v62 }
 0x217   : > { %469 = vst [vmem:[%s153_s5] sm:$0x1] %v467_v63 }
 0x218   : > { %v462_v6 = vpop.permute.xlu1 %461 }
 0x219   : > { %v465_v7 = vsel %vm453_vm4, %v462_v6, %v452_v3 }
 0x21a   : > { %v468_v8 = vsel %vm466_vm5, %v439_v4, %v465_v7 }
 0x21b   : > { %470 = vst [vmem:[%s153_s5 + $0x1] sm:$0x1] %v468_v8 }
 0x21c   : > { %687 = shalt.err (!%p684_p3)
}
 0x21d   : > { %s688_s24 = scalar_lea.hbm %s966_s16, 32  ;;  %s692_s27 = scalar_lea.hbm %s1013_s2, 64 }
 0x21e   : > { %p689_p4 = scmp.ne.s32.totalorder %s966_s16, %s688_s24  ;;  %p693_p9 = scmp.lt.s32.totalorder %s966_s16, %s1013_s2 }
 0x21f   : > { %p694_p10 = scmp.lt.s32.totalorder %s692_s27, %s688_s24 }
 0x220   : > { %p690_p7 = pnand %p689_p4, %p801_p5 }
 0x221   : > { %p695_p11 = por %p694_p10, %p693_p9 }
 0x222   : > { %p691_p8 = pneg %p690_p7 }
 0x224   : > { %p696_p12 = pnand %p695_p11, %p691_p8 }
 0x226   : > { %699 = shalt.err (!%p696_p12)
}
 0x227   : > { %s747_s3 = smov 16  }
 0x228   : > { %588 = dma.vmem_to_hbm [thread:$0]  (%p801_p5), %s959_s6, 32, %s966_s16, %s970_s13, %s747_s3, %s747_s3, %s745_s30  }
 0x229 PF: > { %p594_p13 = scmp.ge.s32.totalorder %s734_s12, 2  ;;  %s500_s4 = sand.u32 1, %s722_s9  }
 0x22a   : > { %s501_s5 = scalar_lea.sflag [#allocation3], %s500_s4 }
 0x22b   : > { %p591_p0 = pnand %p594_p13, %p805_p6 }
 0x22d   : > { %p592_p1 = pneg %p591_p0 }
 0x22f   : > { %717 = dma.done.wait (%p592_p1), %s501_s5, 32  }
 0x230   : > { %719 = vsyncadd (%p592_p1), %s501_s5, 4294967264  ;;  %p12_p2 = scmp.ge.s32.totalorder %s788_s15, 4   ;;  %s1016_s9 = smov %s726_s10 }
 0x231   : > { %s1017_s10 = smov %s730_s11  ;;  %s1018_s11 = smov %s799_s18 }
 0x232   : > { %s1019_s12 = smov %s788_s15  ;;  %14 = sbr.rel (!%p12_p2) target bundleno = 3 (0x3), region = 66 }
 0x237   :  { %506 = vsyncpa [#allocation3], 1 }
 0x238   :  { %508 = vsyncpa [#allocation3 + $0x1], 1 }

</bundles_post_ra>
